<compile_context>
chip_gen: v7x
topology: tpu7x:2x2x1
jax: 0.10.0
libtpu: 0.0.40
codegen_flags: <defaults>
</compile_context>

<pallas_src>
import functools

import jax
import jax.numpy as jnp
from jax import lax
from jax.experimental import pallas as pl
from jax.experimental.pallas import tpu as pltpu

_EPS = 1e-7
_MIB = 1024 * 1024

# Generation-aware sizing (the kernel is purely HBM-bandwidth bound; larger
# blocks amortize the ~0.35 us per-grid-step overhead).
#   block_target : target bytes of ONE input block (in its storage dtype)
#   vmem_budget  : total scoped-VMEM allowed for pipeline buffers + temporaries
#   vmem_cap     : hard cap for vmem_limit_bytes (v7x has only 64 MiB physical)
_GEN_PARAMS = {
    "v5e":     dict(block_target=4 * _MIB, vmem_budget=48 * _MIB, vmem_cap=100 * _MIB),
    "v6e":     dict(block_target=8 * _MIB, vmem_budget=96 * _MIB, vmem_cap=100 * _MIB),
    "v7x":     dict(block_target=8 * _MIB, vmem_budget=44 * _MIB, vmem_cap=48 * _MIB),
    "unknown": dict(block_target=4 * _MIB, vmem_budget=40 * _MIB, vmem_cap=48 * _MIB),
}


def _tpu_generation():
    try:
        kind = jax.devices()[0].device_kind.lower()
    except Exception:
        return "unknown"
    if "v7" in kind:
        return "v7x"
    if "v6" in kind:
        return "v6e"
    if "v5 lite" in kind or "v5lite" in kind or "v5e" in kind:
        return "v5e"
    return "unknown"


def _round_up(x, m):
    return (x + m - 1) // m * m


def _largest_divisor_leq(n, limit):
    limit = max(1, min(n, int(limit)))
    for d in range(limit, 0, -1):
        if n % d == 0:
            return d
    return 1


def _choose_tiling(N, C, HW, itemsize, gen):
    """Pick (NB, hw_tile, hw_padded, vmem_limit_bytes).

    hw_tile is a 128-multiple divisor of hw_padded = round_up(HW, 128), so no
    padding beyond the lane granule is ever needed. NB (a divisor of N) batches
    whole images into one block when a single image is small. VMEM accounting
    is honest: channels are padded to the sublane granule and sub-32-bit inputs
    are charged for their in-kernel f32 working copy.
    """
    params = _GEN_PARAMS[gen]
    hw_padded = _round_up(HW, 128)
    n_units = hw_padded // 128                       # lane granules along HW

    sublane = max(8, 32 // itemsize)                 # 8 f32, 16 bf16, 32 int8
    c_pad_in = _round_up(C, sublane)                 # storage-dtype sublane pad
    c_pad_f32 = _round_up(C, 8)
    f32_copies = 1 if itemsize == 4 else 2           # in-kernel f32 working set

    # Cost of one (1, C, 128) lane granule.
    unit_in_bytes = c_pad_in * 128 * itemsize                   # one input buffer
    unit_vmem = 128 * (4 * c_pad_in * itemsize                  # in+out, x2 buffers
                       + f32_copies * c_pad_f32 * 4)            # f32 temporaries
    fixed_vmem = 2 * _MIB                                       # mosaic scratch

    max_units = min(params["block_target"] // unit_in_bytes,
                    (params["vmem_budget"] - fixed_vmem) // unit_vmem)
    max_units = max(1, int(max_units))

    d = _largest_divisor_leq(n_units, max_units)
    hw_tile = d * 128

    NB = 1
    if d == n_units:                                 # one HW tile per image
        NB = _largest_divisor_leq(N, max_units // n_units)

    # v7x has 2 TensorCores: keep at least 2 blocks along a 'parallel' axis.
    if gen in ("v7x", "unknown") and (N // NB) * (n_units // d) == 1:
        if NB > 1:
            NB = _largest_divisor_leq(N, NB // 2)
        elif n_units > 1:
            d = _largest_divisor_leq(n_units, n_units - 1)
            hw_tile = d * 128

    est_vmem = NB * (hw_tile // 128) * unit_vmem + fixed_vmem
    vmem_limit = int(min(params["vmem_cap"], max(32 * _MIB, est_vmem + 4 * _MIB)))
    return NB, hw_tile, hw_padded, vmem_limit


def _normalize_kernel_p2(x_ref, o_ref):
    # x_ref block: (NB, C, HW_TILE); channel reduction over axis=1 (sublanes).
    x = x_ref[...].astype(jnp.float32)
    denom = jnp.sqrt(jnp.sum(x * x, axis=1, keepdims=True)) + _EPS  # (NB,1,T)
    # Approx EUP reciprocal touches only 1/C of the elements; one Newton step
    # restores ~f32 accuracy. The full-tile op is then a VALU multiply.
    inv = pl.reciprocal(denom, approx=True)
    inv = inv * (2.0 - denom * inv)
    o_ref[...] = (x * inv).astype(o_ref.dtype)


def _normalize_kernel_generic(x_ref, o_ref, *, power):
    # Generic Lp path. Matches the PyTorch reference exactly (no abs(); odd p
    # with a negative channel-sum yields NaN, same as torch).
    x = x_ref[...].astype(jnp.float32)
    if isinstance(power, int):
        xp = lax.integer_pow(x, power)               # VALU, not EUP log/exp
    else:
        xp = jnp.power(x, power)
    norm = jnp.power(jnp.sum(xp, axis=1, keepdims=True), 1.0 / power)
    inv = 1.0 / (norm + _EPS)                        # only (NB, 1, HW_TILE) elems
    o_ref[...] = (x * inv).astype(o_ref.dtype)


def normalize(x, power=2):
    """Pallas equivalent of Normalize(power).forward(x) for NCHW input."""
    if x.ndim < 2:
        raise ValueError("normalize expects at least (N, C, ...) input")
    orig_shape = x.shape
    N, C = orig_shape[0], orig_shape[1]
    HW = 1
    for s in orig_shape[2:]:
        HW *= s
    x_flat = x.reshape(N, C, HW)

    # Integral float exponents (2.0, 4.0, ...) route to the integer fast paths;
    # jnp.power with a float exponent would put full-tile log+exp on the EUP.
    p = power
    if isinstance(p, float) and p.is_integer():
        p = int(p)

    gen = _tpu_generation()
    itemsize = jnp.dtype(x.dtype).itemsize
    NB, hw_tile, hw_padded, vmem_limit = _choose_tiling(N, C, HW, itemsize, gen)

    # Pad only up to the 128-lane granule (skipped entirely when HW is already
    # aligned). Zero padding is safe: 0 / (0 + eps) = 0 in the padded columns.
    if hw_padded != HW:
        x_flat = jnp.pad(x_flat, ((0, 0), (0, 0), (0, hw_padded - HW)))

    if p == 2:
        kernel = _normalize_kernel_p2
    else:
        kernel = functools.partial(_normalize_kernel_generic, power=p)

    block = (NB, C, hw_tile)
    index_map = lambda i, j: (i, 0, j)

    out_flat = pl.pallas_call(
        kernel,
        out_shape=jax.ShapeDtypeStruct((N, C, hw_padded), x.dtype),
        grid_spec=pltpu.PrefetchScalarGridSpec(
            num_scalar_prefetch=0,
            grid=(N // NB, hw_padded // hw_tile),
            in_specs=[pl.BlockSpec(block, index_map)],
            out_specs=pl.BlockSpec(block, index_map),
        ),
        compiler_params=pltpu.CompilerParams(
            dimension_semantics=("parallel", "parallel"),
            vmem_limit_bytes=vmem_limit,
        ),
    )(x_flat)

    if hw_padded != HW:
        out_flat = out_flat[:, :, :HW]
    return out_flat.reshape(orig_shape)


def _reference(x, power=2):
    p = power
    if isinstance(p, float) and p.is_integer():
        p = int(p)
    if isinstance(p, int):
        xp = lax.integer_pow(x, p)
    else:
        xp = jnp.power(x, p)
    norm = jnp.power(jnp.sum(xp, axis=1, keepdims=True), 1.0 / p)
    return x / (norm + _EPS)


if __name__ == "__main__":
    key = jax.random.PRNGKey(0)
    k1, k2 = jax.random.split(key)

    # p=2 fast path, lane-aligned spatial (HW = 256): no pad/slice passes.
    x = jax.random.normal(k1, (2, 4, 16, 16), dtype=jnp.float32)
    out = jax.block_until_ready(normalize(x, power=2))
    ref = _reference(x, power=2)
    assert out.shape == x.shape
    assert jnp.allclose(out, ref, atol=1e-4, rtol=1e-4), "p=2 mismatch vs reference"

    # Non-128-multiple spatial extent (exercises the 128-granule padding path).
    x2 = jax.random.normal(k2, (2, 4, 10, 10), dtype=jnp.float32)
    out2 = jax.block_until_ready(normalize(x2, power=2))
    ref2 = _reference(x2, power=2)
    assert jnp.allclose(out2, ref2, atol=1e-4, rtol=1e-4), "padded p=2 mismatch"

    # Generic Lp path (p=4), dispatched from an integral float exponent.
    out4 = jax.block_until_ready(normalize(x, power=4.0))
    ref4 = _reference(x, power=4)
    assert jnp.allclose(out4, ref4, atol=1e-4, rtol=1e-4), "p=4 mismatch vs reference"

    print("KERNEL_OK")
</pallas_src>

<mosaic_0001>
module attributes {stable_mosaic.version = 11 : i64} {
  func.func @_normalize_kernel_p2(%arg0: i32, %arg1: i32, %arg2: memref<1x4x256xf32, #tpu.memory_space<vmem>>, %arg3: memref<1x4x256xf32, #tpu.memory_space<vmem>>) attributes {dimension_semantics = [#tpu.dimension_semantics<parallel>, #tpu.dimension_semantics<parallel>], iteration_bounds = array<i64: 2, 1>, scalar_prefetch = 0 : i64, scratch_operands = 0 : i64, tpu.core_type = #tpu.core_type<tc>, window_params = [{transform_indices = @transform_0, window_bounds = array<i64: 1, 4, 256>}, {transform_indices = @transform_1, window_bounds = array<i64: 1, 4, 256>}]} {
    %c0 = arith.constant 0 : index
    %c0_0 = arith.constant 0 : index
    %c0_1 = arith.constant 0 : index
    %0 = vector.load %arg2[%c0, %c0_0, %c0_1] : memref<1x4x256xf32, #tpu.memory_space<vmem>>, vector<1x4x256xf32>
    %1 = arith.mulf %0, %0 : vector<1x4x256xf32>
    %cst = arith.constant dense<0.000000e+00> : vector<1x256xf32>
    %2 = vector.multi_reduction <add>, %1, %cst [1] : vector<1x4x256xf32> to vector<1x256xf32>
    %3 = vector.shape_cast %2 : vector<1x256xf32> to vector<1x1x256xf32>
    %4 = math.sqrt %3 : vector<1x1x256xf32>
    %cst_2 = arith.constant 1.000000e-07 : f32
    %5 = vector.broadcast %cst_2 : f32 to vector<1x1x256xf32>
    %6 = arith.addf %4, %5 : vector<1x1x256xf32>
    %7 = tpu.reciprocal %6 {approx = true} : vector<1x1x256xf32> -> vector<1x1x256xf32>
    %8 = arith.mulf %6, %7 : vector<1x1x256xf32>
    %cst_3 = arith.constant 2.000000e+00 : f32
    %9 = vector.broadcast %cst_3 : f32 to vector<1x1x256xf32>
    %10 = arith.subf %9, %8 : vector<1x1x256xf32>
    %11 = arith.mulf %7, %10 : vector<1x1x256xf32>
    %12 = vector.broadcast %11 : vector<1x1x256xf32> to vector<1x4x256xf32>
    %13 = arith.mulf %0, %12 : vector<1x4x256xf32>
    %c0_4 = arith.constant 0 : index
    %c0_5 = arith.constant 0 : index
    %c0_6 = arith.constant 0 : index
    %14 = vector.load %arg3[%c0_4, %c0_5, %c0_6] : memref<1x4x256xf32, #tpu.memory_space<vmem>>, vector<1x4x256xf32>
    tpu.vector_store %arg3[%c0_4, %c0_5, %c0_6], %13 {strides = array<i32>} : memref<1x4x256xf32, #tpu.memory_space<vmem>>, vector<1x4x256xf32>,
    return
  }
  func.func @transform_0(%arg0: i32, %arg1: i32) -> (i32, i32, i32) {
    %c0_i32 = arith.constant 0 : i32
    %c0_i32_0 = arith.constant 0 : i32
    return %arg0, %c0_i32, %arg1 : i32, i32, i32
  }
  func.func @transform_1(%arg0: i32, %arg1: i32) -> (i32, i32, i32) {
    %c0_i32 = arith.constant 0 : i32
    %c0_i32_0 = arith.constant 0 : i32
    return %arg0, %c0_i32, %arg1 : i32, i32, i32
  }
}

</mosaic_0001>

<bundles_post_ra>
// kernel: tpu_custom_call.1
= control target key start
LH: loop header
LB: loop body
LE: loop exit
PB: predicated region body
PF: predicated region fallthrough
CT: control target
= control target key end

     0   :  { %6 = vsyncpa [#allocation3], 0  ;;  %s693_s0 = inlined_call_operand.hbm [shape: f32[2,4,256], index: 0, kind: input, shape index: {}]   ;;  %s694_s1 = inlined_call_operand.hbm [shape: f32[2,4,256], index: 1, kind: output, shape index: {}]  }
   0x1   :  { %8 = vsyncpa [#allocation3 + $0x1], 0 }
   0x2   :  { %9 = vsyncpa [#allocation4], 0 }
   0x3   :  { %11 = vsyncpa [#allocation4 + $0x1], 0  ;;  %s517_s6 = smov 0   ;;  %s519_s7 = smov 0  }
   0x4   :  { %s521_s8 = smov 0   ;;  %s523_s9 = smov 0  }
   0x5   :  { %s525_s10 = smov 0   ;;  %s527_s11 = smov 0  }
   0x6 LB: > { %s304_s12 = sadd.s32 4294967295, %s503_s11   ;;  %s305_s13 = sadd.s32 4294967294, %s503_s11   ;;  %s503_s11 = sphi %s527_s11, %s17_s11   ;;  %s499_s10 = sphi %s525_s10, %s710_s10   ;;  %s495_s9 = sphi %s523_s9, %s709_s9   ;;  %s491_s8 = sphi %s521_s8, %s708_s8   ;;  %s487_s7 = sphi %s519_s7, %s707_s7   ;;  %s483_s6 = sphi %s517_s6, %s706_s6  }
   0x7   : > { %s29_s14 = sadd.s32 1, %s499_s10  ;;  %s38_s15 = sadd.s32 1, %s491_s8 }
   0x8   : > { %p31_p0 = scmp.ge.s32.totalorder %s29_s14, 2  ;;  %p45_p1 = scmp.ne.s32.totalorder %s491_s8, %s487_s7 }
   0x9   : > { %p46_p2 = scmp.eq.s32.totalorder %s503_s11, 0  ;;  %p51_p3 = scmp.ne.s32.totalorder %s487_s7, %s483_s6 }
   0xa   : > { %s712_s14 = smov (%p31_p0, %s29_s14), 0  ;;  %p52_p5 = scmp.eq.s32.totalorder %s304_s12, 0 }
   0xb   : > { %p558_p4 = por %p46_p2, %p45_p1  ;;  %s33_s17 = ssub.s32 %s499_s10, %s712_s14 }
   0xc   : > { %p77_p6 = scmp.eq.s32.totalorder %s304_s12, 1  ;;  %p36_p7 = scmp.eq.s32.totalorder %s33_s17, 0 }
   0xd   : > { %p564_p8 = por %p52_p5, %p51_p3  ;;  %p83_p10 = scmp.eq.s32.totalorder %s305_s13, 1 }
   0xe   : > { %p568_p9 = por %p77_p6, %p45_p1  ;;  %p333_p13 = scmp.lt.s32.totalorder %s503_s11, 2 }
   0xf   : > { %s573_s20 = scalar_select %p36_p7, %s491_s8, %s38_s15  }
  0x10   : > { %s698_s19 = scalar_select %p568_p9, 1, 0 }
  0x11   : > { %p575_p11 = por %p83_p10, %p51_p3  ;;  %s103_s22 = sand.u32 1, %s491_s8  }
  0x12   : > { %s308_s23 = sshll.u32 %s103_s22, 3  ;;  %s319_s24 = sshll.u32 %s499_s10, 7 }
  0x13   : > { %s699_s21 = scalar_select %p575_p11, 1, 0 }
  0x14   : > { %s586_s27 = scalar_lea.hbm %s693_s0, %s319_s24  ;;  %s107_s28 = scalar_lea.vmem [#allocation2], %s308_s23 }
  0x15   : > { %s117_s29 = sshll.u32 %s107_s28, 4  ;;  %p592_p0 = pnand %p333_p13, %p558_p4  ;;  %s588_s29 = int_to_ptr.vmem [resolvable:$true] %s117_s29 }
  0x16   : > { %s104_s2 = scalar_lea.sflag [#allocation3], %s103_s22  ;;  %s391_s3 = scalar_lea.hbm %s586_s27, 128 }
  0x17   : > { %p392_p3 = scmp.ne.s32.totalorder %s586_s27, %s391_s3  ;;  %p393_p5 = pneg %p592_p0 }
  0x18   : > { %s396_s12 = scalar_lea.hbm %s693_s0, 256  ;;  %p397_p4 = scmp.lt.u32.totalorder %s586_s27, %s693_s0 }
  0x19   : > { %p394_p6 = pnand %p393_p5, %p392_p3  ;;  %p398_p10 = scmp.lt.u32.totalorder %s396_s12, %s391_s3 }
  0x1a   : > { %p400_p12 = scmp.lt.u32.totalorder %s391_s3, %s586_s27 }
  0x1b   : > { %p395_p7 = pneg %p394_p6  ;;  %p399_p13 = por %p398_p10, %p397_p4 }
  0x1d   : > { %p401_p1 = por %p400_p12, %p399_p13 }
  0x1f   : > { %p402_p2 = pnand %p401_p1, %p395_p7 }
  0x21   : > { %405 = shalt.err (!%p402_p2)
}
  0x22   : > { %s406_s16 = scalar_lea.vmem %s588_s29, 128  ;;  %s505_s17 = smov [#allocation2]  }
  0x23   : > { %p407_p3 = scmp.ne.s32.totalorder %s588_s29, %s406_s16  ;;  %s411_s22 = sshll.u32 %s505_s17, 4  ;;  %s412_s22 = int_to_ptr.vmem [resolvable:$false] %s411_s22 }
  0x24   : > { %s413_s23 = scalar_lea.vmem %s412_s22, 256  ;;  %p414_p9 = scmp.lt.s32.totalorder %s588_s29, %s412_s22 }
  0x25   : > { %p409_p6 = pnand %p407_p3, %p393_p5  ;;  %p415_p4 = scmp.lt.s32.totalorder %s413_s23, %s406_s16 }
  0x27   : > { %p410_p11 = pneg %p409_p6  ;;  %p416_p10 = por %p415_p4, %p414_p9 }
  0x29   : > { %p417_p12 = pnand %p416_p10, %p410_p11 }
  0x2b   : > { %420 = shalt.err (!%p417_p12)
}
  0x2c   : > { %328 = dma.hbm_to_vmem [thread:$0]  (!%p592_p0), %s586_s27, 128, %s588_s29, %s104_s2  }
  0x2d   : > { %p701_p1 = scmp.lt.s32.totalorder %s503_s11, 3  ;;  %p702_p2 = scmp.ge.s32.totalorder %s503_s11, 1 }
  0x2f   : > { %p123_p5 = pnand %p702_p2, %p701_p1 }
  0x30   : > { %s628_s24 = sand.u32 (!%p123_p5), 1, %s487_s7  }
  0x31   : > { %126 = sbr.rel (%p123_p5) target bundleno = 127 (0x7f), region = 24  ;;  %s312_s25 = sshll.u32 (!%p123_p5), %s628_s24, 3 }
  0x32   : > { %s129_s26 = scalar_lea.sflag (!%p123_p5), [#allocation3], %s628_s24  ;;  %s132_s28 = scalar_lea.vmem (!%p123_p5), [#allocation2], %s312_s25 }
  0x38   : > { %474 = dma.done.wait (%p564_p8), %s129_s26, 128  }
  0x39   : > { %476 = vsyncadd (%p564_p8), %s129_s26, 4294967168  ;;  %v153_v0 = vld [vmem:[%s132_s28] sm:$0xff]  ;;  %vm158_vm0 = vcmask 1043456   ;;  %s150_s18 = scalar_lea.vmem [#allocation5], %s312_s25  ;;  %s320_s29 = sshll.u32 %s495_s9, 7 }
  0x3a   : > { %v154_v1 = vmul.f32 %v153_v0, %v153_v0  ;;  %s220_s27 = sshll.u32 %s150_s18, 4  ;;  %s646_s3 = scalar_lea.hbm %s694_s1, %s320_s29  ;;  %s641_s27 = int_to_ptr.vmem [resolvable:$true] %s220_s27 }
  0x3b   : > { %s204_s4 = scalar_lea.sflag [#allocation4], %s628_s24  ;;  %s421_s5 = scalar_lea.vmem %s641_s27, 128 }
  0x3c   : > { %v156_v2 = vcombine.high %v154_v1, %v154_v1  ;;  %v159_v3 = vsel %vm158_vm0, %v154_v1, 0.0  ;;  %p422_p8 = scmp.ne.s32.totalorder %s641_s27, %s421_s5  ;;  %p703_p9 = scmp.ne.s32.totalorder %s698_s19, 0 }
  0x3d   : > { %v160_v4 = vrot.slane %v159_v3, 4  ;;  %s506_s9 = smov [#allocation5]  }
  0x3e   : > { %v166_v5 = vsel %vm158_vm0, %v156_v2, 0.0  ;;  %p423_p11 = pnand %p422_p8, %p703_p9  ;;  %s425_s12 = sshll.u32 %s506_s9, 4  ;;  %s426_s12 = int_to_ptr.vmem [resolvable:$false] %s425_s12 }
  0x3f   : > { %v161_v6 = vadd.f32 %v160_v4, %v159_v3  ;;  %v167_v7 = vrot.slane %v166_v5, 4  ;;  %s427_s13 = scalar_lea.vmem %s426_s12, 256  ;;  %p428_p7 = scmp.lt.s32.totalorder %s641_s27, %s426_s12 }
  0x40   : > { %p424_p0 = pneg %p423_p11  ;;  %p429_p13 = scmp.lt.s32.totalorder %s427_s13, %s421_s5 }
  0x41   : > { %v162_v8 = vrot.slane %v161_v6, 2  ;;  %v168_v9 = vadd.f32 %v167_v7, %v166_v5 }
  0x42   : > { %p430_p3 = por %p429_p13, %p428_p7 }
  0x43   : > { %v163_v10 = vadd.f32 %v162_v8, %v161_v6  ;;  %v169_v11 = vrot.slane %v168_v9, 2 }
  0x44   : > { %p431_p6 = pnand %p430_p3, %p424_p0 }
  0x45   : > { %v164_v12 = vrot.slane %v163_v10, 1  ;;  %v170_v13 = vadd.f32 %v169_v11, %v168_v9 }
  0x47   : > { %v165_v14 = vadd.f32 %v164_v12, %v163_v10  ;;  %v171_v15 = vrot.slane %v170_v13, 1 }
  0x49   : > { %v172_v16 = vadd.f32 %v171_v15, %v170_v13  ;;  %383 = vrsqrt.f32 %v165_v14  ;;  %vm175_vm1 = vcmp.eq.f32.partialorder %v165_v14, inf  ;;  %v178_v18 = vand.u32 2147483648, %v165_v14 }
  0x4a   : > { %vm177_vm2 = vcmp.eq.f32.partialorder %v165_v14, 0.0 }
  0x4b   : > { %385 = vrsqrt.f32 %v172_v16  ;;  %vm182_vm3 = vcmp.eq.f32.partialorder %v172_v16, inf  ;;  %v185_v21 = vand.u32 2147483648, %v172_v16  ;;  %vm184_vm4 = vcmp.eq.f32.partialorder %v172_v16, 0.0 }
  0x53   : > { %v384_v17 = vpop.eup %383 }
  0x54   : > { %v174_v19 = vmul.f32 %v384_v17, %v165_v14 }
  0x55   : > { %v386_v20 = vpop.eup %385 }
  0x56   : > { %v176_v22 = vsel %vm175_vm1, %v165_v14, %v174_v19  ;;  %v181_v23 = vmul.f32 %v386_v20, %v172_v16 }
  0x57   : > { %v179_v24 = vsel %vm177_vm2, %v178_v18, %v176_v22 }
  0x58   : > { %v183_v25 = vsel %vm182_vm3, %v172_v16, %v181_v23  ;;  %v187_v26 = vadd.f32 1e-07, %v179_v24 }
  0x59   : > { %v186_v27 = vsel %vm184_vm4, %v185_v21, %v183_v25 }
  0x5a   : > { %v188_v28 = vadd.f32 1e-07, %v186_v27  ;;  %387 = vrcp.f32 %v187_v26 }
  0x5c   : > { %389 = vrcp.f32 %v188_v28 }
  0x64   : > { %v388_v29 = vpop.eup %387 }
  0x65   : > { %v191_v30 = vmul.f32 %v388_v29, %v187_v26 }
  0x66   : > { %v390_v31 = vpop.eup %389 }
  0x67   : > { %v192_v32 = vmul.f32 %v390_v31, %v188_v28  ;;  %v193_v33 = vsub.f32 2.0, %v191_v30 }
  0x69   : > { %v194_v34 = vsub.f32 2.0, %v192_v32  ;;  %v195_v35 = vmul.f32 %v388_v29, %v193_v33 }
  0x6b   : > { %v196_v36 = vmul.f32 %v390_v31, %v194_v34 }
  0x6d   : > { %v199_v37 = vcombine.low %v195_v35, %v196_v36 }
  0x6f   : > { %v201_v38 = vmul.f32 %v199_v37, %v153_v0 }
  0x71   : > { %202 = vst [vmem:[%s150_s18] sm:$0xff] %v201_v38 }
  0x72   : > { %434 = shalt.err (!%p431_p6)
}
  0x73   : > { %s435_s15 = scalar_lea.hbm %s646_s3, 128  ;;  %s439_s22 = scalar_lea.hbm %s694_s1, 256 }
  0x74   : > { %p436_p4 = scmp.ne.s32.totalorder %s646_s3, %s435_s15  ;;  %p440_p1 = scmp.lt.u32.totalorder %s646_s3, %s694_s1 }
  0x75   : > { %p441_p2 = scmp.lt.u32.totalorder %s439_s22, %s435_s15  ;;  %p443_p8 = scmp.lt.u32.totalorder %s435_s15, %s646_s3 }
  0x76   : > { %p437_p10 = pnand %p436_p4, %p703_p9 }
  0x77   : > { %p442_p5 = por %p441_p2, %p440_p1 }
  0x78   : > { %p438_p12 = pneg %p437_p10 }
  0x79   : > { %p444_p11 = por %p443_p8, %p442_p5 }
  0x7b   : > { %p445_p0 = pnand %p444_p11, %p438_p12 }
  0x7d   : > { %448 = shalt.err (!%p445_p0)
}
  0x7e   : > { %323 = dma.vmem_to_hbm [thread:$0]  (%p703_p9), %s641_s27, 128, %s646_s3, %s204_s4  }
  0x7f PF: > { %s232_s25 = sand.u32 1, %s483_s6   ;;  %p704_p7 = scmp.ne.s32.totalorder %s699_s21, 0 }
  0x80   : > { %p705_p13 = scmp.ge.s32.totalorder %s503_s11, 2  ;;  %s233_s26 = scalar_lea.sflag [#allocation4], %s232_s25 }
  0x82   : > { %p330_p3 = pnand %p705_p13, %p704_p7 }
  0x84   : > { %478 = dma.done.wait (!%p330_p3), %s233_s26, 128  }
  0x85   : > { %480 = vsyncadd (!%p330_p3), %s233_s26, 4294967168  ;;  %s17_s11 = sadd.s32 1, %s503_s11   ;;  %s706_s6 = smov %s487_s7 }
  0x86   : > { %p14_p6 = scmp.ge.s32.totalorder %s17_s11, 4   ;;  %s707_s7 = smov %s491_s8 }
  0x87   : > { %s708_s8 = smov %s573_s20  ;;  %s709_s9 = smov %s499_s10 }
  0x88   : > { %s710_s10 = smov %s712_s14  ;;  %16 = sbr.rel (!%p14_p6) target bundleno = 6 (0x6), region = 69 }
  0x8f   :  { %238 = vsyncpa [#allocation3], 1 }
  0x90   :  { %240 = vsyncpa [#allocation3 + $0x1], 1 }
  0x91   :  { %241 = vsyncpa [#allocation4], 1 }
  0x92   :  { %243 = vsyncpa [#allocation4 + $0x1], 1 }

</bundles_post_ra>
